<compile_context>
chip_gen: v5e
topology: v5e:2x2
jax: 0.10.0
libtpu: 0.0.40
codegen_flags: <defaults>
</compile_context>

<pallas_src>
import functools

import jax
import jax.numpy as jnp
from jax import lax
from jax.experimental import pallas as pl
from jax.experimental.pallas import tpu as pltpu


def _round_up(x: int, m: int) -> int:
    return ((x + m - 1) // m) * m


# ---------------------------------------------------------------------------
# Path 1: large tables. Table stays in HBM; each gathered row is DMA'd
# directly into the output VMEM tile (no vld/vst, no vreg round-trip).
# ---------------------------------------------------------------------------
def _hbm_gather_kernel(tok_ref, emb_hbm, out_ref, sem, *, tokens_per_step):
    """Gather `tokens_per_step` embedding rows per grid step via manual DMA.

    tok_ref : SMEM scalar-prefetch ref with flattened (clamped) token ids.
    emb_hbm : embedding table left in HBM (memory_space=pl.ANY).
    out_ref : (T, Dw) VMEM output tile; rows are filled directly by DMA.
    sem     : (1,) shared DMA semaphore; every row copy signals it.
    """
    T = tokens_per_step
    base = pl.program_id(0) * T

    def issue(r, carry):
        tok = tok_ref[base + r]                 # scalar read from SMEM
        pltpu.make_async_copy(
            emb_hbm.at[pl.ds(tok, 1), :],       # one table row in HBM
            out_ref.at[pl.ds(r, 1), :],         # straight into the output tile
            sem.at[0],                          # shared DMA semaphore
        ).start()
        return carry

    # Issue all T row fetches before waiting on any of them (hides HBM latency).
    # Modest unroll keeps descriptor issue rate up without bloating code size.
    lax.fori_loop(0, T, issue, 0, unroll=8)

    # Single combined drain: the shared DMA semaphore accumulates the bytes of
    # every row copy; one wait descriptor sized (T, Dw) consumes them all.
    pltpu.make_async_copy(out_ref, out_ref, sem.at[0]).wait()


def _hbm_gather(flat_ids, table, T):
    n, = flat_ids.shape
    _, Dw = table.shape
    kernel = functools.partial(_hbm_gather_kernel, tokens_per_step=T)
    return pl.pallas_call(
        kernel,
        out_shape=jax.ShapeDtypeStruct((n, Dw), table.dtype),
        grid_spec=pltpu.PrefetchScalarGridSpec(
            num_scalar_prefetch=1,                         # token ids -> SMEM
            grid=(n // T,),
            in_specs=[pl.BlockSpec(memory_space=pl.ANY)],  # table stays in HBM
            out_specs=pl.BlockSpec((T, Dw), lambda i, tok: (i, 0)),
            scratch_shapes=[pltpu.SemaphoreType.DMA((1,))],  # ONE shared sem
        ),
        compiler_params=pltpu.CompilerParams(
            # Rows are independent -> grid steps can be split across the two
            # TensorCores on v7x; harmless on v5e/v6e.
            dimension_semantics=("parallel",),
        ),
    )(flat_ids, table)


# ---------------------------------------------------------------------------
# Path 2: small tables. Keep the whole table resident in VMEM (constant
# index_map -> loaded once) and gather rows via an exact one-hot matmul on the
# MXU. Removes all random-address HBM traffic for small-vocab configs.
# ---------------------------------------------------------------------------
def _vmem_onehot_kernel(ids_ref, emb_ref, out_ref):
    ids = ids_ref[...]                                       # (T, 1) int32
    T = ids.shape[0]
    V = emb_ref.shape[0]
    iota = lax.broadcasted_iota(jnp.int32, (T, V), 1)
    onehot = (ids == iota).astype(emb_ref.dtype)             # exact 0/1 weights
    out_ref[...] = jnp.dot(
        onehot, emb_ref[...], preferred_element_type=jnp.float32
    ).astype(out_ref.dtype)


def _vmem_gather(flat_ids, table, T):
    n, = flat_ids.shape
    V, D = table.shape
    ids2d = flat_ids.reshape(n, 1)
    return pl.pallas_call(
        _vmem_onehot_kernel,
        out_shape=jax.ShapeDtypeStruct((n, D), table.dtype),
        grid_spec=pltpu.PrefetchScalarGridSpec(
            num_scalar_prefetch=0,
            grid=(n // T,),
            in_specs=[
                pl.BlockSpec((T, 1), lambda i: (i, 0)),      # per-step ids
                pl.BlockSpec((V, D), lambda i: (0, 0)),      # resident table
            ],
            out_specs=pl.BlockSpec((T, D), lambda i: (i, 0)),
        ),
        compiler_params=pltpu.CompilerParams(
            dimension_semantics=("parallel",),
        ),
    )(ids2d, table)


# ---------------------------------------------------------------------------
# Wrapper: equivalent of F.embedding(tokens, embedding, padding_idx=pad_token)
# forward pass.
# ---------------------------------------------------------------------------
def llama_embedding(tokens: jax.Array, embedding: jax.Array, pad_token: int,
                    *, tokens_per_step: int | None = None,
                    force_hbm_gather: bool = False,
                    vmem_table_bytes: int = 2 * 1024 * 1024,
                    max_tokens_per_call: int = 32768) -> jax.Array:
    # padding_idx only changes gradient behaviour in torch; forward is a gather.
    del pad_token

    lead_shape = tokens.shape
    V, D = embedding.shape
    dtype = embedding.dtype
    itemsize = dtype.itemsize

    flat = tokens.reshape(-1).astype(jnp.int32)
    # Clamp so an out-of-range id can never drive an out-of-bounds HBM DMA.
    flat = jnp.clip(flat, 0, V - 1)
    n = flat.shape[0]

    use_vmem = (
        not force_hbm_gather
        and jnp.issubdtype(dtype, jnp.floating)
        and V * D * itemsize <= vmem_table_bytes
        and V <= 2048                      # bounds the (T, V) one-hot intermediate
    )

    if use_vmem or itemsize >= 4 or (D * itemsize) % 4 != 0:
        gather_table, Dw, gdtype = embedding, D, dtype
    else:
        # Sub-32-bit tables: view each row as packed uint32 words so every
        # per-row DMA is a native, unmasked 32-bit sublane write.
        epw = 4 // itemsize
        gather_table = lax.bitcast_convert_type(
            embedding.reshape(V, D // epw, epw), jnp.uint32)
        Dw, gdtype = D // epw, jnp.dtype(jnp.uint32)
    gsize = jnp.dtype(gdtype).itemsize

    # Tokens per grid step: dtype-aware sublane minimum; sized so the
    # double-buffered (T, Dw) output tile stays around ~4 MiB (fits default
    # scoped VMEM on v5e/v6e/v7x alike); capped at 256.
    min_rows = {4: 8, 2: 16, 1: 32}.get(gsize, 8)
    if tokens_per_step is None:
        T = min(256, max(min_rows, (2 * 1024 * 1024) // max(1, Dw * gsize)))
        T = min(T, _round_up(n, min_rows))   # don't gather more pad rows than needed
    else:
        T = int(tokens_per_step)
    T = max(min_rows, (T // min_rows) * min_rows)

    n_pad = _round_up(n, T)
    if n_pad != n:
        flat = jnp.pad(flat, (0, n_pad - n))   # pad ids gather row 0, sliced off below

    if use_vmem:
        out = _vmem_gather(flat, gather_table, T)
    else:
        # Bound the scalar-prefetch SMEM footprint (1-D prefetch pads to
        # next_pow2(4*N) bytes) by chunking very long token streams.
        chunk = max(T, (max_tokens_per_call // T) * T)
        if n_pad <= chunk:
            out = _hbm_gather(flat, gather_table, T)
        else:
            pieces = [_hbm_gather(flat[s:s + chunk], gather_table, T)
                      for s in range(0, n_pad, chunk)]
            out = jnp.concatenate(pieces, axis=0)
        if gdtype != dtype:
            out = lax.bitcast_convert_type(out, dtype).reshape(n_pad, D)

    return out[:n].reshape(*lead_shape, D)


if __name__ == "__main__":
    key = jax.random.PRNGKey(0)
    k_emb, k_tok, k_tok2 = jax.random.split(key, 3)

    VOCAB, DIM = 64, 128
    B, S = 2, 8
    PAD_TOKEN = 0

    emb_f32 = jax.random.normal(k_emb, (VOCAB, DIM), dtype=jnp.float32)
    emb_bf16 = emb_f32.astype(jnp.bfloat16)
    tokens = jax.random.randint(k_tok, (B, S), 0, VOCAB, dtype=jnp.int32)
    tokens_long = jax.random.randint(k_tok2, (B, 40), 0, VOCAB, dtype=jnp.int32)

    ref_f32 = jnp.take(emb_f32, tokens, axis=0)
    ref_bf16 = jnp.take(emb_bf16, tokens, axis=0)
    ref_long = jnp.take(emb_f32, tokens_long, axis=0)

    # 1) small-table fast path (table resident in VMEM, one-hot MXU gather)
    out_vmem = jax.block_until_ready(llama_embedding(tokens, emb_f32, PAD_TOKEN))
    assert out_vmem.shape == (B, S, DIM)
    assert jnp.allclose(out_vmem, ref_f32, atol=1e-5), "VMEM fast-path mismatch"

    # 2) HBM DMA-gather path (the large-table / production path), f32 rows
    out_hbm = jax.block_until_ready(
        llama_embedding(tokens, emb_f32, PAD_TOKEN, force_hbm_gather=True))
    assert jnp.array_equal(out_hbm, ref_f32), "HBM gather mismatch (f32)"

    # 3) HBM path with a bf16 table (rows repacked as uint32 words for the DMA)
    out_bf16 = jax.block_until_ready(
        llama_embedding(tokens, emb_bf16, PAD_TOKEN, force_hbm_gather=True))
    assert jnp.array_equal(out_bf16, ref_bf16), "HBM gather mismatch (bf16 repack)"

    # 4) multi-step grid (several token tiles in one call)
    out_long = jax.block_until_ready(
        llama_embedding(tokens_long, emb_f32, PAD_TOKEN,
                        force_hbm_gather=True, tokens_per_step=16))
    assert jnp.array_equal(out_long, ref_long), "HBM gather mismatch (multi-step)"

    print("KERNEL_OK")
</pallas_src>

<mosaic_0001>
module attributes {stable_mosaic.version = 11 : i64} {
  func.func @_vmem_onehot_kernel(%arg0: i32, %arg1: memref<16x1xi32, #tpu.memory_space<vmem>>, %arg2: memref<64x128xf32, #tpu.memory_space<vmem>>, %arg3: memref<16x128xf32, #tpu.memory_space<vmem>>) attributes {dimension_semantics = [#tpu.dimension_semantics<parallel>], iteration_bounds = array<i64: 1>, scalar_prefetch = 0 : i64, scratch_operands = 0 : i64, tpu.core_type = #tpu.core_type<tc>, window_params = [{transform_indices = @transform_0, window_bounds = array<i64: 16, 1>}, {pipeline_mode = #tpu.pipeline_mode<synchronous>, transform_indices = @transform_1, window_bounds = array<i64: 64, 128>}, {transform_indices = @transform_2, window_bounds = array<i64: 16, 128>}]} {
    %c0 = arith.constant 0 : index
    %c0_0 = arith.constant 0 : index
    %0 = vector.load %arg1[%c0, %c0_0] : memref<16x1xi32, #tpu.memory_space<vmem>>, vector<16x1xi32>
    %1 = tpu.iota {dimensions = array<i32: 1>} : vector<16x64xi32>
    %2 = vector.broadcast %0 : vector<16x1xi32> to vector<16x64xi32>
    %3 = arith.cmpi eq, %2, %1 : vector<16x64xi32>
    %4 = arith.extui %3 : vector<16x64xi1> to vector<16x64xi32>
    %5 = arith.sitofp %4 : vector<16x64xi32> to vector<16x64xf32>
    %c0_1 = arith.constant 0 : index
    %c0_2 = arith.constant 0 : index
    %6 = vector.load %arg2[%c0_1, %c0_2] : memref<64x128xf32, #tpu.memory_space<vmem>>, vector<64x128xf32>
    %cst = arith.constant dense<0.000000e+00> : vector<16x128xf32>
    %7 = tpu.matmul %5, %6, %cst {dimension_numbers = #tpu.dot_dimension_numbers<[1], [0], [0], [1], [0, 0, 1, 1], [], []>} : vector<16x64xf32>, vector<64x128xf32>, vector<16x128xf32> -> vector<16x128xf32>
    %c0_3 = arith.constant 0 : index
    %c0_4 = arith.constant 0 : index
    %8 = vector.load %arg3[%c0_3, %c0_4] : memref<16x128xf32, #tpu.memory_space<vmem>>, vector<16x128xf32>
    tpu.vector_store %arg3[%c0_3, %c0_4], %7 {strides = array<i32>} : memref<16x128xf32, #tpu.memory_space<vmem>>, vector<16x128xf32>,
    return
  }
  func.func @transform_0(%arg0: i32) -> (i32, i32) {
    %c0_i32 = arith.constant 0 : i32
    %c0_i32_0 = arith.constant 0 : i32
    return %arg0, %c0_i32 : i32, i32
  }
  func.func @transform_1(%arg0: i32) -> (i32, i32) {
    %c0_i32 = arith.constant 0 : i32
    %c0_i32_0 = arith.constant 0 : i32
    %c0_i32_1 = arith.constant 0 : i32
    return %c0_i32, %c0_i32_0 : i32, i32
  }
  func.func @transform_2(%arg0: i32) -> (i32, i32) {
    %c0_i32 = arith.constant 0 : i32
    %c0_i32_0 = arith.constant 0 : i32
    return %arg0, %c0_i32 : i32, i32
  }
}

</mosaic_0001>

<bundles_post_ra>
// kernel: tpu_custom_call.1
= control target key start
LH: loop header
LB: loop body
LE: loop exit
PB: predicated region body
PF: predicated region fallthrough
CT: control target
= control target key end

     0   :  { %7 = vsyncpa [#allocation3], 0  ;;  %s213_s0 = inlined_call_operand.vmem [shape: s32[16,1], index: 0, kind: input, shape index: {}]   ;;  %s214_s1 = inlined_call_operand.hbm [shape: f32[64,128], index: 1, kind: input, shape index: {}]   ;;  %s215_s2 = inlined_call_operand.hbm [shape: f32[16,128], index: 2, kind: output, shape index: {}]  }
   0x1   :  { %8 = vsyncpa [#allocation4], 0  ;;  %s15_s11 = sshll.u32 %s214_s1, 4  ;;  %s174_s12 = smov [#allocation2]   ;;  %s16_s11 = int_to_ptr.hbm [resolvable:$true] %s15_s11 }
   0x2   :  { %s17_s13 = sshll.u32 %s174_s12, 4  ;;  %s175_s14 = smov 128   ;;  %s18_s13 = int_to_ptr.vmem [resolvable:$true] %s17_s13 }
   0x3   :  { %s176_s15 = smov 8  }
   0x4   :  { %23 = dma.hbm_to_vmem [thread:$0]  %s16_s11, 1024, %s18_s13, [#allocation3], %s175_s14, %s175_s14, %s176_s15  }
   0x5   :  { %170 = dma.done.wait [#allocation3], 1024  }
   0x6   :  { %171 = vsyncadd [#allocation3], 4294966272  ;;  %v177_v0 = vmov 0   ;;  %v28_v1 = vld [vmem:[%s213_s0] sm:$0xff]  ;;  %v51_v2 = vld [vmem:[#allocation2 + $0x38] sm:$0xff]  ;;  %v30_v11 = vlaneseq  ;;  %vm52_vm0 = vcmask 523264  }
   0x7   :  { %121 = vset.pattern.permute.xlu0 %v177_v0  ;;  %67 = vmatpush.msra.mxu0 %v51_v2  ;;  %v50_v3 = vld [vmem:[#allocation2 + $0x30] sm:$0xff]  ;;  %v49_v4 = vld [vmem:[#allocation2 + $0x28] sm:$0xff]  ;;  %v48_v5 = vld [vmem:[#allocation2 + $0x20] sm:$0xff]  ;;  %v178_v14 = vmov 0.0   ;;  %s90_s22 = sshll.u32 %s215_s2, 4  ;;  %s91_s22 = int_to_ptr.hbm [resolvable:$true] %s90_s22 }
   0x8   :  { %33 = vperm.xlu0 %121, %v28_v1   ;;  %107 = vmatpush.msra.mxu1 %v51_v2  ;;  %v29_v6 = vld [vmem:[%s213_s0 + $0x8] sm:$0xff]  ;;  %v47_v7 = vld [vmem:[#allocation2 + $0x18] sm:$0xff]  ;;  %v46_v8 = vld [vmem:[#allocation2 + $0x10] sm:$0xff]  ;;  %v31_v12 = vand.u32 127, %v30_v11  ;;  %s179_s0 = smov [#allocation5]  }
   0x9   :  { %68 = vmatpush.msra.mxu0 %v50_v3  ;;  %v45_v9 = vld [vmem:[#allocation2 + $0x8] sm:$0xff]  ;;  %v44_v10 = vld [vmem:[#allocation2] sm:$0xff]  ;;  %s88_s19 = sshll.u32 %s179_s0, 4  ;;  %s89_s19 = int_to_ptr.vmem [resolvable:$true] %s88_s19 }
   0xa   :  { %108 = vmatpush.msra.mxu1 %v50_v3 }
   0xb   :  { %69 = vmatpush.msra.mxu0 %v49_v4 }
   0xc   :  { %109 = vmatpush.msra.mxu1 %v49_v4 }
   0xd   :  { %70 = vmatpush.msra.mxu0 %v48_v5 }
   0xe   :  { %110 = vmatpush.msra.mxu1 %v48_v5 }
   0xf   :  { %71 = vmatpush.msra.mxu0 %v47_v7 }
  0x10   :  { %36 = vperm.xlu0 %121, %v29_v6   ;;  %111 = vmatpush.msra.mxu1 %v47_v7 }
  0x11   :  { %72 = vmatpush.msra.mxu0 %v46_v8 }
  0x12   :  { %112 = vmatpush.msra.mxu1 %v46_v8 }
  0x13   :  { %73 = vmatpush.msra.mxu0 %v45_v9 }
  0x14   :  { %113 = vmatpush.msra.mxu1 %v45_v9 }
  0x15   :  { %74 = vmatpush.msra.mxu0 %v44_v10 }
  0x16   :  { %114 = vmatpush.msra.mxu1 %v44_v10 }
  0x7a   :  { %v34_v13 = vpop.permute.xlu0 %33 }
  0x7b   :  { %vm38_vm1 = vcmp.eq.s32.totalorder %v34_v13, %v31_v12 }
  0x7c   :  { %v103_v15 = vsel %vm38_vm1, 1.0, %v178_v14 }
  0x7d   :  { %105 = vmatmul.msk.f32.vlgmr.msra.gmra.mxu0 %vm52_vm0, %v103_v15 }
  0x82   :  { %v37_v16 = vpop.permute.xlu0 %36 }
  0x83   :  { %vm39_vm2 = vcmp.eq.s32.totalorder %v37_v16, %v31_v12 }
  0x84   :  { %v104_v17 = vsel %vm39_vm2, 1.0, %v178_v14 }
  0x85   :  { %106 = vmatmul.msk.f32.vlgmr.msra.gmra.mxu1 %vm52_vm0, %v104_v17 }
  0xfa   :  { %v76_v18 = vpop.f32.mrf.mxu0 }
  0xfb   :  { %82 = vst [vmem:[#allocation5] sm:$0xff] %v76_v18 }
 0x102   :  { %v79_v19 = vpop.f32.mrf.mxu1 }
 0x103   :  { %83 = vst [vmem:[#allocation5 + $0x8] sm:$0xff] %v79_v19 }
 0x104   :  { %96 = dma.vmem_to_hbm [thread:$0]  %s89_s19, 256, %s91_s22, [#allocation4], %s175_s14, %s175_s14, %s176_s15  }
 0x105   :  { %172 = dma.done.wait [#allocation4], 256  }
 0x106   :  { %173 = vsyncadd [#allocation4], 4294967040 }
 0x107   :  { %101 = vsyncpa [#allocation3], 1 }
 0x108   :  { %102 = vsyncpa [#allocation4], 1 }

</bundles_post_ra>
